<compile_context>
chip_gen: v7x
topology: tpu7x:2x2x1
jax: 0.10.0
libtpu: 0.0.40
codegen_flags: <defaults>
</compile_context>

<pallas_src>
import jax
import jax.numpy as jnp
from jax.experimental import pallas as pl
from jax.experimental.pallas import tpu as pltpu


def _pinn_kernel(xT_ref, w1_ref, b1_ref, w2_ref, b2_ref, w3_ref, b3_ref, o_ref):
    # Transposed layout: batch lives on the lane axis.
    xT = xT_ref[...]                              # (2, TM)
    w1 = w1_ref[...]                              # (64, 2)

    # Layer 1: K=2 contraction done on the VPU as two broadcast FMAs
    # (a K=2 matmul would waste the MXU while paying full push/pop latency).
    h1 = (w1[:, 0:1] * xT[0:1, :]
          + w1[:, 1:2] * xT[1:2, :]
          + b1_ref[...])                          # (64, TM)
    h1 = jnp.maximum(h1, 0.0)

    # Layer 2: the one matmul that belongs on the MXU, (64,64) @ (64,TM).
    h2 = jnp.dot(w2_ref[...], h1,
                 preferred_element_type=jnp.float32) + b2_ref[...]
    h2 = jnp.maximum(h2, 0.0)                     # (64, TM)

    # Layer 3: output width 1 -> VPU multiply + XLU sublane reduce, producing
    # a lane-dense (1, TM) block (no masked vst on writeback).
    o = jnp.sum(h2 * w3_ref[...], axis=0, keepdims=True) + b3_ref[...]   # (1, TM)
    o_ref[...] = o.astype(o_ref.dtype)


def _round_up(a, b):
    return (a + b - 1) // b * b


def pinn_forward(x, params, *, tm=1024):
    """x: (N, 2) float32.

    params (torch layout): w1 (64,2), b1 (64,1), w2 (64,64), b2 (64,1),
                           w3 (64,1)  [= fc3.weight.T], b3 (1,1).
    Returns (N, 1) float32, matching the PyTorch module.
    """
    N, Din = x.shape
    assert Din == 2
    w1, b1 = params["w1"], params["b1"]
    w2, b2 = params["w2"], params["b2"]
    w3, b3 = params["w3"], params["b3"]

    # Pick a 128-aligned batch tile; keep >=2 grid steps when there is enough
    # work so both v7x TensorCores stay busy.  Pad N (with zeros) to a multiple
    # of the tile instead of asserting divisibility.
    n_pad = _round_up(max(N, 128), 128)
    tm_eff = min(_round_up(tm, 128), n_pad)
    if n_pad // tm_eff < 2 and n_pad >= 256:
        tm_eff = _round_up(n_pad // 2, 128)
    n_pad = _round_up(n_pad, tm_eff)
    grid = (n_pad // tm_eff,)

    # Batch on the lane axis: (2, n_pad), zero-padded tail.
    xT = jnp.zeros((2, n_pad), jnp.float32).at[:, :N].set(x.T)

    full = lambda a: pl.BlockSpec(a.shape, lambda i: (0, 0))   # replicate small params

    out_padded = pl.pallas_call(
        _pinn_kernel,
        out_shape=jax.ShapeDtypeStruct((1, n_pad), jnp.float32),
        grid=grid,
        in_specs=[
            pl.BlockSpec((2, tm_eff), lambda i: (0, i)),       # x tile (batch on lanes)
            full(w1), full(b1),
            full(w2), full(b2),
            full(w3), full(b3),
        ],
        out_specs=pl.BlockSpec((1, tm_eff), lambda i: (0, i)), # lane-dense output
        compiler_params=pltpu.CompilerParams(
            dimension_semantics=("parallel",),
        ),
    )(xT, w1, b1, w2, b2, w3, b3)

    return out_padded[0, :N].reshape(N, 1)


def init_params(key):
    """Deterministic init matching nn.Linear(2,64) -> (64,64) -> (64,1)."""
    ks = jax.random.split(key, 6)

    def lin(kw, kb, fan_in, fan_out):
        bound = 1.0 / jnp.sqrt(fan_in)
        # torch layout: weight (out, in); bias stored as a (out, 1) column.
        w = jax.random.uniform(kw, (fan_out, fan_in), jnp.float32, -bound, bound)
        b = jax.random.uniform(kb, (fan_out, 1), jnp.float32, -bound, bound)
        return w, b

    w1, b1 = lin(ks[0], ks[1], 2, 64)      # fc1
    w2, b2 = lin(ks[2], ks[3], 64, 64)     # fc2
    w3t, b3 = lin(ks[4], ks[5], 64, 1)     # fc3: weight (1,64) -> store transposed (64,1)
    return dict(w1=w1, b1=b1, w2=w2, b2=b2, w3=w3t.T.reshape(64, 1), b3=b3)


def _reference(x, p):
    h1 = jnp.maximum(x @ p["w1"].T + p["b1"][:, 0], 0.0)
    h2 = jnp.maximum(h1 @ p["w2"].T + p["b2"][:, 0], 0.0)
    return h2 @ p["w3"] + p["b3"]


if __name__ == "__main__":
    key = jax.random.PRNGKey(0)
    kx, kp = jax.random.split(key)

    N = 200                                  # ragged batch: exercises padding + 2 grid steps
    x = jax.random.normal(kx, (N, 2), jnp.float32)
    params = init_params(kp)

    out = pinn_forward(x, params)
    out = jax.block_until_ready(out)

    ref = _reference(x, params)
    assert out.shape == (N, 1)
    assert jnp.allclose(out, ref, atol=1e-5, rtol=1e-5)

    print("KERNEL_OK")
</pallas_src>

<mosaic_0001>
module attributes {stable_mosaic.version = 11 : i64} {
  func.func @_pinn_kernel(%arg0: i32, %arg1: memref<2x128xf32, #tpu.memory_space<vmem>>, %arg2: memref<64x2xf32, #tpu.memory_space<vmem>>, %arg3: memref<64x1xf32, #tpu.memory_space<vmem>>, %arg4: memref<64x64xf32, #tpu.memory_space<vmem>>, %arg5: memref<64x1xf32, #tpu.memory_space<vmem>>, %arg6: memref<64x1xf32, #tpu.memory_space<vmem>>, %arg7: memref<1x1xf32, #tpu.memory_space<vmem>>, %arg8: memref<1x128xf32, #tpu.memory_space<vmem>>) attributes {dimension_semantics = [#tpu.dimension_semantics<parallel>], iteration_bounds = array<i64: 2>, scalar_prefetch = 0 : i64, scratch_operands = 0 : i64, tpu.core_type = #tpu.core_type<tc>, window_params = [{transform_indices = @transform_0, window_bounds = array<i64: 2, 128>}, {pipeline_mode = #tpu.pipeline_mode<synchronous>, transform_indices = @transform_1, window_bounds = array<i64: 64, 2>}, {pipeline_mode = #tpu.pipeline_mode<synchronous>, transform_indices = @transform_2, window_bounds = array<i64: 64, 1>}, {pipeline_mode = #tpu.pipeline_mode<synchronous>, transform_indices = @transform_3, window_bounds = array<i64: 64, 64>}, {pipeline_mode = #tpu.pipeline_mode<synchronous>, transform_indices = @transform_4, window_bounds = array<i64: 64, 1>}, {pipeline_mode = #tpu.pipeline_mode<synchronous>, transform_indices = @transform_5, window_bounds = array<i64: 64, 1>}, {pipeline_mode = #tpu.pipeline_mode<synchronous>, transform_indices = @transform_6, window_bounds = array<i64: 1, 1>}, {transform_indices = @transform_7, window_bounds = array<i64: 1, 128>}]} {
    %c0 = arith.constant 0 : index
    %c0_0 = arith.constant 0 : index
    %0 = vector.load %arg1[%c0, %c0_0] : memref<2x128xf32, #tpu.memory_space<vmem>>, vector<2x128xf32>
    %c0_1 = arith.constant 0 : index
    %c0_2 = arith.constant 0 : index
    %1 = vector.load %arg2[%c0_1, %c0_2] : memref<64x2xf32, #tpu.memory_space<vmem>>, vector<64x2xf32>
    %2 = vector.extract_strided_slice %1 {offsets = [0, 0], sizes = [64, 1], strides = [1, 1]} : vector<64x2xf32> to vector<64x1xf32>
    %3 = vector.extract_strided_slice %0 {offsets = [0, 0], sizes = [1, 128], strides = [1, 1]} : vector<2x128xf32> to vector<1x128xf32>
    %4 = vector.broadcast %2 : vector<64x1xf32> to vector<64x128xf32>
    %5 = vector.broadcast %3 : vector<1x128xf32> to vector<64x128xf32>
    %6 = arith.mulf %4, %5 : vector<64x128xf32>
    %7 = vector.extract_strided_slice %1 {offsets = [0, 1], sizes = [64, 1], strides = [1, 1]} : vector<64x2xf32> to vector<64x1xf32>
    %8 = vector.extract_strided_slice %0 {offsets = [1, 0], sizes = [1, 128], strides = [1, 1]} : vector<2x128xf32> to vector<1x128xf32>
    %9 = vector.broadcast %7 : vector<64x1xf32> to vector<64x128xf32>
    %10 = vector.broadcast %8 : vector<1x128xf32> to vector<64x128xf32>
    %11 = arith.mulf %9, %10 : vector<64x128xf32>
    %12 = arith.addf %6, %11 : vector<64x128xf32>
    %c0_3 = arith.constant 0 : index
    %c0_4 = arith.constant 0 : index
    %13 = vector.load %arg3[%c0_3, %c0_4] : memref<64x1xf32, #tpu.memory_space<vmem>>, vector<64x1xf32>
    %14 = vector.broadcast %13 : vector<64x1xf32> to vector<64x128xf32>
    %15 = arith.addf %12, %14 : vector<64x128xf32>
    %cst = arith.constant 0.000000e+00 : f32
    %16 = vector.broadcast %cst : f32 to vector<64x128xf32>
    %17 = arith.maximumf %15, %16 : vector<64x128xf32>
    %c0_5 = arith.constant 0 : index
    %c0_6 = arith.constant 0 : index
    %18 = vector.load %arg4[%c0_5, %c0_6] : memref<64x64xf32, #tpu.memory_space<vmem>>, vector<64x64xf32>
    %cst_7 = arith.constant dense<0.000000e+00> : vector<64x128xf32>
    %19 = tpu.matmul %18, %17, %cst_7 {dimension_numbers = #tpu.dot_dimension_numbers<[1], [0], [0], [1], [0, 0, 1, 1], [], []>} : vector<64x64xf32>, vector<64x128xf32>, vector<64x128xf32> -> vector<64x128xf32>
    %c0_8 = arith.constant 0 : index
    %c0_9 = arith.constant 0 : index
    %20 = vector.load %arg5[%c0_8, %c0_9] : memref<64x1xf32, #tpu.memory_space<vmem>>, vector<64x1xf32>
    %21 = vector.broadcast %20 : vector<64x1xf32> to vector<64x128xf32>
    %22 = arith.addf %19, %21 : vector<64x128xf32>
    %cst_10 = arith.constant 0.000000e+00 : f32
    %23 = vector.broadcast %cst_10 : f32 to vector<64x128xf32>
    %24 = arith.maximumf %22, %23 : vector<64x128xf32>
    %c0_11 = arith.constant 0 : index
    %c0_12 = arith.constant 0 : index
    %25 = vector.load %arg6[%c0_11, %c0_12] : memref<64x1xf32, #tpu.memory_space<vmem>>, vector<64x1xf32>
    %26 = vector.broadcast %25 : vector<64x1xf32> to vector<64x128xf32>
    %27 = arith.mulf %24, %26 : vector<64x128xf32>
    %cst_13 = arith.constant dense<0.000000e+00> : vector<128xf32>
    %28 = vector.multi_reduction <add>, %27, %cst_13 [0] : vector<64x128xf32> to vector<128xf32>
    %29 = vector.shape_cast %28 : vector<128xf32> to vector<1x128xf32>
    %c0_14 = arith.constant 0 : index
    %c0_15 = arith.constant 0 : index
    %30 = vector.load %arg7[%c0_14, %c0_15] : memref<1x1xf32, #tpu.memory_space<vmem>>, vector<1x1xf32>
    %31 = vector.broadcast %30 : vector<1x1xf32> to vector<1x128xf32>
    %32 = arith.addf %29, %31 : vector<1x128xf32>
    %c0_16 = arith.constant 0 : index
    %c0_17 = arith.constant 0 : index
    %33 = vector.load %arg8[%c0_16, %c0_17] : memref<1x128xf32, #tpu.memory_space<vmem>>, vector<1x128xf32>
    tpu.vector_store %arg8[%c0_16, %c0_17], %32 {strides = array<i32>} : memref<1x128xf32, #tpu.memory_space<vmem>>, vector<1x128xf32>,
    return
  }
  func.func @transform_0(%arg0: i32) -> (i32, i32) {
    %c0_i32 = arith.constant 0 : i32
    %c0_i32_0 = arith.constant 0 : i32
    return %c0_i32, %arg0 : i32, i32
  }
  func.func @transform_1(%arg0: i32) -> (i32, i32) {
    %c0_i32 = arith.constant 0 : i32
    %c0_i32_0 = arith.constant 0 : i32
    %c0_i32_1 = arith.constant 0 : i32
    return %c0_i32, %c0_i32_0 : i32, i32
  }
  func.func @transform_2(%arg0: i32) -> (i32, i32) {
    %c0_i32 = arith.constant 0 : i32
    %c0_i32_0 = arith.constant 0 : i32
    %c0_i32_1 = arith.constant 0 : i32
    return %c0_i32, %c0_i32_0 : i32, i32
  }
  func.func @transform_3(%arg0: i32) -> (i32, i32) {
    %c0_i32 = arith.constant 0 : i32
    %c0_i32_0 = arith.constant 0 : i32
    %c0_i32_1 = arith.constant 0 : i32
    return %c0_i32, %c0_i32_0 : i32, i32
  }
  func.func @transform_4(%arg0: i32) -> (i32, i32) {
    %c0_i32 = arith.constant 0 : i32
    %c0_i32_0 = arith.constant 0 : i32
    %c0_i32_1 = arith.constant 0 : i32
    return %c0_i32, %c0_i32_0 : i32, i32
  }
  func.func @transform_5(%arg0: i32) -> (i32, i32) {
    %c0_i32 = arith.constant 0 : i32
    %c0_i32_0 = arith.constant 0 : i32
    %c0_i32_1 = arith.constant 0 : i32
    return %c0_i32, %c0_i32_0 : i32, i32
  }
  func.func @transform_6(%arg0: i32) -> (i32, i32) {
    %c0_i32 = arith.constant 0 : i32
    %c0_i32_0 = arith.constant 0 : i32
    %c0_i32_1 = arith.constant 0 : i32
    return %c0_i32, %c0_i32_0 : i32, i32
  }
  func.func @transform_7(%arg0: i32) -> (i32, i32) {
    %c0_i32 = arith.constant 0 : i32
    %c0_i32_0 = arith.constant 0 : i32
    return %c0_i32, %arg0 : i32, i32
  }
}

</mosaic_0001>

<bundles_post_ra>
// kernel: tpu_custom_call.1
= control target key start
LH: loop header
LB: loop body
LE: loop exit
PB: predicated region body
PF: predicated region fallthrough
CT: control target
= control target key end

     0   :  { %s1279_s0 = inlined_call_operand.vmem [shape: f32[2,256], index: 0, kind: input, shape index: {}]   ;;  %s1280_s1 = inlined_call_operand.vmem [shape: f32[64,2], index: 1, kind: input, shape index: {}]   ;;  %s1281_s2 = inlined_call_operand.vmem [shape: f32[64,1], index: 2, kind: input, shape index: {}]   ;;  %s1282_s3 = inlined_call_operand.vmem [shape: f32[64,64], index: 3, kind: input, shape index: {}]   ;;  %s1283_s4 = inlined_call_operand.vmem [shape: f32[64,1], index: 4, kind: input, shape index: {}]   ;;  %s1284_s5 = inlined_call_operand.vmem [shape: f32[64,1], index: 5, kind: input, shape index: {}]   ;;  %s1285_s6 = inlined_call_operand.<no memory space> [shape: f32[1,1], index: 6, kind: input, shape index: {}]   ;;  %s1286_s7 = inlined_call_operand.hbm [shape: f32[1,256], index: 7, kind: output, shape index: {}]  }
   0x1   :  { %v12_v0 = vstv %s1285_s6 }
   0x2   :  { %13 = vst [vmem:[#allocation2] sm:$0x1] %v12_v0 }
   0x3   :  { %14 = vsyncpa [#allocation4], 0 }
   0x4   :  { %16 = vsyncpa [#allocation4 + $0x1], 0  ;;  %s1040_s26 = smov 0   ;;  %s1042_s27 = smov 0  }
   0x5   :  { %s1044_s28 = smov 0   ;;  %s1046_s29 = smov 0  }
   0x6 LB: > { %s1061_s6 = sadd.s32 4294967295, %s992_s29   ;;  %s795_s30 = sadd.s32 4294967294, %s992_s29   ;;  %s992_s29 = sphi %s1046_s29, %s1292_s29   ;;  %s988_s28 = sphi %s1044_s28, %s1291_s28   ;;  %s984_s27 = sphi %s1042_s27, %s1290_s27   ;;  %s980_s26 = sphi %s1040_s26, %s1289_s26  }
   0x7   : > { %s1065_s8 = sadd.s32 1, %s992_s29   ;;  %s181_s9 = sadd.s32 1, %s988_s28 }
   0x8   : > { %s178_s10 = ssub.s32 %s992_s29, %s1065_s8  ;;  %p191_p0 = scmp.ne.s32.totalorder %s988_s28, %s984_s27 }
   0x9   : > { %p179_p1 = scmp.eq.s32.totalorder %s178_s10, 0  ;;  %p192_p2 = scmp.eq.s32.totalorder %s1061_s6, 1 }
   0xa   : > { %p197_p3 = scmp.ne.s32.totalorder %s984_s27, %s980_s26  ;;  %p198_p4 = scmp.eq.s32.totalorder %s795_s30, 1 }
   0xb   : > { %s1076_s11 = scalar_select %p179_p1, %s988_s28, %s181_s9  }
   0xc   : > { %p1078_p5 = por %p192_p2, %p191_p0  ;;  %p1082_p6 = por %p198_p4, %p197_p3 }
   0xd   : > { %p798_p7 = scmp.ge.s32.totalorder %s992_s29, 1  ;;  %p241_p8 = scmp.lt.s32.totalorder %s992_s29, 3 }
   0xf   : > { %p242_p9 = pnand %p798_p7, %p241_p8 }
  0x10   : > { %v278_v1 = vld [vmem:[%s1280_s1 + $0x10] sm:$0xff] (!%p242_p9)  ;;  %v276_v2 = vld [vmem:[%s1280_s1] sm:$0xff] (!%p242_p9)  ;;  %v994_v3 = vmov (!%p242_p9), 1   ;;  %v277_v5 = vld [vmem:[%s1280_s1 + $0x8] sm:$0xff] (!%p242_p9)  ;;  %v995_v8 = vmov (!%p242_p9), 0   ;;  %vm508_vm0 = vcmask (!%p242_p9), 523264   ;;  %v324_v40 = vlaneseq (!%p242_p9) }
  0x11   : > { %245 = sbr.rel (%p242_p9) target bundleno = 482 (0x1e2), region = 48  ;;  %922 = vset.pattern.permute.xlu0 (!%p242_p9), %v994_v3  ;;  %920 = vset.pattern.permute.xlu1 (!%p242_p9), %v994_v3  ;;  %v280_v4 = vld [vmem:[%s1280_s1 + $0x20] sm:$0xff] (!%p242_p9)  ;;  %v282_v6 = vld [vmem:[%s1280_s1 + $0x30] sm:$0xff] (!%p242_p9)  ;;  %v279_v7 = vld [vmem:[%s1280_s1 + $0x18] sm:$0xff] (!%p242_p9)  ;;  %p271_p10 = scmp.lt.s32.totalorder (!%p242_p9), %s1061_s6, 1 }
  0x12   : > { %345 = vperm.xlu0 (!%p242_p9), %922, %v278_v1   ;;  %337 = vperm.xlu1 (!%p242_p9), %920, %v276_v2   ;;  %v388_v9 = vld [vmem:[%s1281_s2] sm:$0xff] (!%p242_p9)  ;;  %v389_v10 = vld [vmem:[%s1281_s2 + $0x8] sm:$0xff] (!%p242_p9)  ;;  %v391_v12 = vld [vmem:[%s1281_s2 + $0x18] sm:$0xff] (!%p242_p9)  ;;  %v1194_v43 = vshrl.u32 (!%p242_p9), %v324_v40, 7  ;;  %s269_s24 = sand.u32 (!%p242_p9), 1, %s984_s27   ;;  %s808_s25 = sshll.u32 (!%p242_p9), %s1061_s6, 4 }
  0x13   : > { %v281_v11 = vld [vmem:[%s1280_s1 + $0x28] sm:$0xff] (!%p242_p9)  ;;  %v460_v14 = vld [vmem:[%s1283_s4] sm:$0xff] (!%p242_p9)  ;;  %v390_v15 = vld [vmem:[%s1281_s2 + $0x10] sm:$0xff] (!%p242_p9)  ;;  %s1237_s15 = scalar_lea.hbm (!%p242_p9), %s1286_s7, %s808_s25  ;;  %s728_s16 = scalar_lea.sflag (!%p242_p9), [#allocation4], %s269_s24 }
  0x14   : > { %v393_v13 = vld [vmem:[%s1281_s2 + $0x28] sm:$0xff] (!%p242_p9)  ;;  %v462_v16 = vld [vmem:[%s1283_s4 + $0x10] sm:$0xff] (!%p242_p9)  ;;  %v646_v17 = vld [vmem:[%s1284_s5] sm:$0xff] (!%p242_p9)  ;;  %v370_v46 = vsub.s32 (!%p242_p9), 1, %v1194_v43  ;;  %v326_v47 = vsub.s32 (!%p242_p9), 0, %v1194_v43  ;;  %s996_s17 = smov (!%p242_p9), [#allocation3]  }
  0x15   : > { %v283_v18 = vld [vmem:[%s1280_s1 + $0x38] sm:$0xff] (!%p242_p9)  ;;  %v464_v19 = vld [vmem:[%s1283_s4 + $0x20] sm:$0xff] (!%p242_p9)  ;;  %v465_v20 = vld [vmem:[%s1283_s4 + $0x28] sm:$0xff] (!%p242_p9)  ;;  %s934_s18 = sshll.u32 (!%p242_p9), %s996_s17, 4  ;;  %s935_s18 = int_to_ptr.vmem [resolvable:$false] %s934_s18 }
  0x16   : > { %353 = vperm.xlu0 (!%p242_p9), %922, %v280_v4   ;;  %341 = vperm.xlu1 (!%p242_p9), %920, %v277_v5   ;;  %v392_v21 = vld [vmem:[%s1281_s2 + $0x20] sm:$0xff] (!%p242_p9)  ;;  %v466_v22 = vld [vmem:[%s1283_s4 + $0x30] sm:$0xff] (!%p242_p9)  ;;  %v467_v24 = vld [vmem:[%s1283_s4 + $0x38] sm:$0xff] (!%p242_p9)  ;;  %s936_s19 = scalar_lea.vmem (!%p242_p9), %s935_s18, 32 }
  0x17   : > { %v394_v23 = vld [vmem:[%s1281_s2 + $0x30] sm:$0xff] (!%p242_p9)  ;;  %v395_v25 = vld [vmem:[%s1281_s2 + $0x38] sm:$0xff] (!%p242_p9)  ;;  %v461_v27 = vld [vmem:[%s1283_s4 + $0x8] sm:$0xff] (!%p242_p9) }
  0x18   : > { %v652_v26 = vld [vmem:[%s1284_s5 + $0x30] sm:$0xff]  ;;  %v715_v28 = vld [vmem:[#allocation2] sm:$0x1]  ;;  %v463_v29 = vld [vmem:[%s1283_s4 + $0x18] sm:$0xff]  ;;  %s272_s22 = scalar_select %p271_p10, %s1061_s6, 1 }
  0x19   : > { %v452_v30 = vld [vmem:[%s1282_s3] sm:$0xff]  ;;  %v647_v32 = vld [vmem:[%s1284_s5 + $0x8] sm:$0xff]  ;;  %v648_v33 = vld [vmem:[%s1284_s5 + $0x10] sm:$0xff] }
  0x1a   : > { %361 = vperm.xlu0 %922, %v282_v6   ;;  %921 = vset.pattern.permute.xlu1 %v995_v8  ;;  %v456_v31 = vld [vmem:[%s1282_s3 + $0x20] sm:$0xff]  ;;  %v649_v34 = vld [vmem:[%s1284_s5 + $0x18] sm:$0xff]  ;;  %v651_v36 = vld [vmem:[%s1284_s5 + $0x28] sm:$0xff]  ;;  %s799_s23 = sshll.u32 %s272_s22, 1 }
  0x1b   : > { %301 = vperm.xlu1 %921, %v279_v7   ;;  %843 = vmatprep.mubr.msk.f32.mxu0 %vm508_vm0, %v452_v30  ;;  %v650_v35 = vld [vmem:[%s1284_s5 + $0x20] sm:$0xff]  ;;  %v653_v37 = vld [vmem:[%s1284_s5 + $0x38] sm:$0xff]  ;;  %s274_s30 = scalar_lea.vmem %s1279_s0, %s799_s23 }
  0x1c   : > { %849 = vmatprep.mubr.msk.f32.mxu1 %vm508_vm0, %v456_v31  ;;  %v275_v48 = vld [vmem:[%s274_s30] sm:$0x3]  ;;  %s270_s30 = scalar_lea.vmem [#allocation3], %s269_s24 }
  0x1d   : > { %v371_v51 = vrot.slane %v275_v48, %v370_v46  ;;  %v327_v52 = vrot.slane %v275_v48, %v326_v47  ;;  %s740_s9 = sshll.u32 %s270_s30, 4  ;;  %s1239_s9 = int_to_ptr.vmem [resolvable:$true] %s740_s9 }
  0x1e   : > { %927 = vset.pattern.permute.xlu0 %v995_v8  ;;  %s930_s6 = scalar_lea.vmem %s1239_s9, 16  ;;  %p937_p0 = scmp.lt.s32.totalorder %s1239_s9, %s935_s18 }
  0x1f   : > { %286 = vperm.xlu0 %927, %v276_v2   ;;  %923 = vset.pattern.permute.xlu1 %v994_v3  ;;  %p931_p11 = scmp.ne.s32.totalorder %s1239_s9, %s930_s6  ;;  %p938_p1 = scmp.lt.s32.totalorder %s936_s19, %s930_s6 }
  0x20   : > { %349 = vperm.xlu1 %923, %v279_v7  }
  0x21   : > { %p932_p12 = pnand %p931_p11, %p1078_p5  ;;  %p939_p2 = por %p938_p1, %p937_p0 }
  0x23   : > { %291 = vperm.xlu0 %927, %v277_v5   ;;  %p933_p13 = pneg %p932_p12 }
  0x24   : > { %924 = vset.pattern.permute.xlu1 %v995_v8 }
  0x25   : > { %398 = vperm.xlu1 %924, %v388_v9   ;;  %p940_p3 = pnand %p939_p2, %p933_p13 }
  0x27   : > { %296 = vperm.xlu0 %927, %v278_v1  }
  0x29   : > { %306 = vperm.xlu1 %924, %v280_v4  }
  0x2b   : > { %403 = vperm.xlu0 %927, %v389_v10  }
  0x2d   : > { %311 = vperm.xlu1 %924, %v281_v11  }
  0x2f   : > { %413 = vperm.xlu0 %927, %v391_v12  }
  0x31   : > { %925 = vset.pattern.permute.xlu1 %v994_v3 }
  0x32   : > { %357 = vperm.xlu1 %925, %v281_v11  }
  0x33   : > { %423 = vperm.xlu0 %927, %v393_v13  }
  0x36   : > { %926 = vset.pattern.permute.xlu1 %v995_v8 }
  0x37   : > { %470 = vperm.xlu0 %927, %v460_v14   ;;  %408 = vperm.xlu1 %926, %v390_v15  }
  0x3b   : > { %480 = vperm.xlu0 %927, %v462_v16   ;;  %316 = vperm.xlu1 %926, %v282_v6  }
  0x3f   : > { %656 = vperm.xlu0 %927, %v646_v17   ;;  %321 = vperm.xlu1 %926, %v283_v18  }
  0x43   : > { %490 = vperm.xlu0 %927, %v464_v19   ;;  %928 = vset.pattern.permute.xlu1 %v994_v3 }
  0x44   : > { %365 = vperm.xlu1 %928, %v283_v18  }
  0x47   : > { %495 = vperm.xlu0 %927, %v465_v20  }
  0x48   : > { %929 = vset.pattern.permute.xlu1 %v995_v8 }
  0x49   : > { %418 = vperm.xlu1 %929, %v392_v21  }
  0x4b   : > { %500 = vperm.xlu0 %927, %v466_v22  }
  0x4d   : > { %428 = vperm.xlu1 %929, %v394_v23  }
  0x4f   : > { %505 = vperm.xlu0 %927, %v467_v24  }
  0x51   : > { %433 = vperm.xlu1 %929, %v395_v25  }
  0x53   : > { %686 = vperm.xlu0 %927, %v652_v26  }
  0x55   : > { %475 = vperm.xlu1 %929, %v461_v27  }
  0x57   : > { %718 = vperm.xlu0 %927, %v715_v28  }
  0x59   : > { %485 = vperm.xlu1 %929, %v463_v29  }
  0x5d   : > { %661 = vperm.xlu1 %929, %v647_v32  }
  0x61   : > { %666 = vperm.xlu1 %929, %v648_v33  }
  0x65   : > { %671 = vperm.xlu1 %929, %v649_v34  }
  0x69   : > { %676 = vperm.xlu1 %929, %v650_v35  }
  0x6d   : > { %681 = vperm.xlu1 %929, %v651_v36  }
  0x71   : > { %691 = vperm.xlu1 %929, %v653_v37  }
  0x91   : > { %v338_v38 = vpop.permute.xlu1 %337  ;;  %v346_v39 = vpop.permute.xlu0 %345 }
  0x92   : > { %v372_v56 = vmul.f32 %v371_v51, %v338_v38  ;;  %v374_v7 = vmul.f32 %v371_v51, %v346_v39 }
  0x95   : > { %v342_v41 = vpop.permute.xlu1 %341  ;;  %v354_v42 = vpop.permute.xlu0 %353 }
  0x96   : > { %v373_v59 = vmul.f32 %v371_v51, %v342_v41  ;;  %v376_v24 = vmul.f32 %v371_v51, %v354_v42 }
  0x99   : > { %v1196_v44 = vpop.permute.xlu0 %361 }
  0x9a   : > { %v302_v45 = vpop.permute.xlu1 %301  ;;  %v378_v34 = vmul.f32 %v371_v51, %v1196_v44  ;;  %v453_v44 = vld [vmem:[%s1282_s3 + $0x8] sm:$0xff] }
  0x9b   : > { %v331_v8 = vmul.f32 %v327_v52, %v302_v45 }
  0x9e   : > { %v287_v49 = vpop.permute.xlu0 %286 }
  0x9f   : > { %v350_v50 = vpop.permute.xlu1 %349  ;;  %v328_v54 = vmul.f32 %v327_v52, %v287_v49 }
  0xa0   : > { %v375_v5 = vmul.f32 %v371_v51, %v350_v50 }
  0xa1   : > { %v380_v60 = vadd.f32 %v372_v56, %v328_v54  ;;  %v458_v54 = vld [vmem:[%s1282_s3 + $0x30] sm:$0xff]  ;;  %v459_v56 = vld [vmem:[%s1282_s3 + $0x38] sm:$0xff] }
  0xa2   : > { %v292_v53 = vpop.permute.xlu0 %291  ;;  %v383_v12 = vadd.f32 %v375_v5, %v331_v8 }
  0xa3   : > { %v329_v57 = vmul.f32 %v327_v52, %v292_v53 }
  0xa4   : > { %v399_v55 = vpop.permute.xlu1 %398 }
  0xa5   : > { %v436_v62 = vadd.f32 %v399_v55, %v380_v60  ;;  %v381_v63 = vadd.f32 %v373_v59, %v329_v57  ;;  %v455_v55 = vld [vmem:[%s1282_s3 + $0x18] sm:$0xff] }
  0xa6   : > { %v297_v58 = vpop.permute.xlu0 %296 }
  0xa7   : > { %v444_v3 = vmax.f32 %v436_v62, 0.0  ;;  %v330_v9 = vmul.f32 %v327_v52, %v297_v58 }
  0xa8   : > { %v307_v61 = vpop.permute.xlu1 %306 }
  0xa9   : > { %v382_v14 = vadd.f32 %v374_v7, %v330_v9  ;;  %v332_v25 = vmul.f32 %v327_v52, %v307_v61 }
  0xaa   : > { %v404_v0 = vpop.permute.xlu0 %403 }
  0xab   : > { %v437_v1 = vadd.f32 %v404_v0, %v381_v63  ;;  %v384_v30 = vadd.f32 %v376_v24, %v332_v25 }
  0xac   : > { %v312_v2 = vpop.permute.xlu1 %311 }
  0xad   : > { %v445_v4 = vmax.f32 %v437_v1, 0.0  ;;  %v333_v23 = vmul.f32 %v327_v52, %v312_v2 }
  0xae   : > { %v414_v11 = vpop.permute.xlu0 %413 }
  0xaf   : > { %v855_v6 = vpack.c.bf16 %v445_v4, %v444_v3  ;;  %v439_v13 = vadd.f32 %v414_v11, %v383_v12 }
  0xb1   : > { %v358_v10 = vpop.permute.xlu1 %357  ;;  %856 = vmatprep.subr.bf16.mxu0 %v855_v6  ;;  %871 = vmatprep.subr.bf16.mxu1 %v855_v6  ;;  %v447_v17 = vmax.f32 %v439_v13, 0.0 }
  0xb2   : > { %858 = vmatpush3.bf16.msra.mxu0 %v855_v6  ;;  %875 = vmatpush3.bf16.msra.mxu1 %v855_v6  ;;  %v377_v22 = vmul.f32 %v371_v51, %v358_v10  ;;  %v424_v28 = vpop.permute.xlu0 %423 }
  0xb4   : > { %v385_v26 = vadd.f32 %v377_v22, %v333_v23 }
  0xb6   : > { %v409_v15 = vpop.permute.xlu1 %408  ;;  %v441_v29 = vadd.f32 %v424_v28, %v385_v26  ;;  %v471_v57 = vpop.permute.xlu0 %470 }
  0xb7   : > { %v438_v16 = vadd.f32 %v409_v15, %v382_v14 }
  0xb8   : > { %v449_v35 = vmax.f32 %v441_v29, 0.0 }
  0xb9   : > { %v446_v18 = vmax.f32 %v438_v16, 0.0 }
  0xba   : > { %v317_v19 = vpop.permute.xlu1 %316  ;;  %v481_v59 = vpop.permute.xlu0 %480 }
  0xbb   : > { %v859_v20 = vpack.c.bf16 %v447_v17, %v446_v18  ;;  %v334_v32 = vmul.f32 %v327_v52, %v317_v19 }
  0xbd   : > { %860 = vmatprep.subr.bf16.mxu0 %v859_v20  ;;  %872 = vmatprep.subr.bf16.mxu1 %v859_v20  ;;  %v386_v41 = vadd.f32 %v378_v34, %v334_v32 }
  0xbe   : > { %v322_v21 = vpop.permute.xlu1 %321  ;;  %862 = vmatpush3.bf16.msra.mxu0 %v859_v20  ;;  %876 = vmatpush3.bf16.msra.mxu1 %v859_v20  ;;  %v657_v61 = vpop.permute.xlu0 %656 }
  0xbf   : > { %v335_v39 = vmul.f32 %v327_v52, %v322_v21  ;;  %v454_v52 = vld [vmem:[%s1282_s3 + $0x10] sm:$0xff] }
  0xc2   : > { %v491_v63 = vpop.permute.xlu0 %490 }
  0xc3   : > { %v366_v27 = vpop.permute.xlu1 %365 }
  0xc4   : > { %v379_v36 = vmul.f32 %v371_v51, %v366_v27  ;;  %v457_v51 = vld [vmem:[%s1282_s3 + $0x28] sm:$0xff] }
  0xc6   : > { %v387_v42 = vadd.f32 %v379_v36, %v335_v39  ;;  %v496_v1 = vpop.permute.xlu0 %495 }
  0xc8   : > { %v419_v31 = vpop.permute.xlu1 %418 }
  0xc9   : > { %v440_v33 = vadd.f32 %v419_v31, %v384_v30 }
  0xca   : > { %v501_v9 = vpop.permute.xlu0 %500 }
  0xcb   : > { %v448_v37 = vmax.f32 %v440_v33, 0.0 }
  0xcc   : > { %v429_v38 = vpop.permute.xlu1 %428 }
  0xcd   : > { %v863_v40 = vpack.c.bf16 %v449_v35, %v448_v37  ;;  %v442_v45 = vadd.f32 %v429_v38, %v386_v41 }
  0xce   : > { %v506_v29 = vpop.permute.xlu0 %505 }
  0xcf   : > { %864 = vmatprep.subr.bf16.mxu0 %v863_v40  ;;  %873 = vmatprep.subr.bf16.mxu1 %v863_v40  ;;  %v450_v49 = vmax.f32 %v442_v45, 0.0 }
  0xd0   : > { %v434_v46 = vpop.permute.xlu1 %433  ;;  %866 = vmatpush3.bf16.msra.mxu0 %v863_v40  ;;  %877 = vmatpush3.bf16.msra.mxu1 %v863_v40 }
  0xd1   : > { %v443_v48 = vadd.f32 %v434_v46, %v387_v42 }
  0xd2   : > { %v687_v41 = vpop.permute.xlu0 %686 }
  0xd3   : > { %v451_v50 = vmax.f32 %v443_v48, 0.0 }
  0xd4   : > { %v476_v58 = vpop.permute.xlu1 %475 }
  0xd5   : > { %v867_v53 = vpack.c.bf16 %v451_v50, %v450_v49 }
  0xd7   : > { %868 = vmatprep.subr.bf16.mxu0 %v867_v53  ;;  %874 = vmatprep.subr.bf16.mxu1 %v867_v53 }
  0xd8   : > { %870 = vmatpush3.bf16.msra.mxu0 %v867_v53  ;;  %878 = vmatpush3.bf16.msra.mxu1 %v867_v53  ;;  %v486_v60 = vpop.permute.xlu1 %485 }
  0xdb   : > { %844 = vmatmul.mubr.msk.f32.vlgmr.msra.gmra.mrb[0].mxu0 %vm508_vm0, %v453_v44  ;;  %850 = vmatmul.mubr.msk.f32.vlgmr.msra.gmra.mrb[0].mxu1 %vm508_vm0, %v457_v51 }
  0xdc   : > { %846 = vmatprep.mubr.msk.f32.mxu0 %vm508_vm0, %v454_v52  ;;  %852 = vmatprep.mubr.msk.f32.mxu1 %vm508_vm0, %v458_v54  ;;  %v662_v62 = vpop.permute.xlu1 %661  ;;  %v719_v54 = vpop.permute.xlu0 %718 }
  0xdf   : > { %847 = vmatmul.mubr.msk.f32.gmra.mrb[2].mxu0 %vm508_vm0, %v455_v55  ;;  %853 = vmatmul.mubr.msk.f32.gmra.mrb[2].mxu1 %vm508_vm0, %v459_v56  ;;  %v724_v56 = vrot.slane %v719_v54, %v326_v47 }
  0xe0   : > { %v667_v0 = vpop.permute.xlu1 %666 }
  0xe4   : > { %v672_v2 = vpop.permute.xlu1 %671 }
  0xe8   : > { %v677_v21 = vpop.permute.xlu1 %676 }
  0xec   : > { %v682_v34 = vpop.permute.xlu1 %681 }
  0xf0   : > { %v692_v46 = vpop.permute.xlu1 %691 }
 0x1ae   : > { %v845_v3 = vpop.f32.mrb[0].mxu0  ;;  %v851_v4 = vpop.f32.mrb[0].mxu1 }
 0x1af   : > { %v605_v5 = vadd.f32 %v845_v3, %v476_v58  ;;  %v599_v6 = vpop.f32.mrb[1].mxu0  ;;  %v619_v7 = vpop.f32.mrb[1].mxu1  ;;  %v625_v22 = vadd.f32 %v851_v4, %v496_v1 }
 0x1b0   : > { %v600_v8 = vadd.f32 %v599_v6, %v471_v57  ;;  %v620_v19 = vadd.f32 %v619_v7, %v491_v63 }
 0x1b1   : > { %v639_v10 = vmax.f32 %v605_v5, 0.0  ;;  %v643_v30 = vmax.f32 %v625_v22, 0.0 }
 0x1b2   : > { %v638_v11 = vmax.f32 %v600_v8, 0.0  ;;  %v848_v12 = vpop.f32.mrb[2].mxu0  ;;  %v854_v13 = vpop.f32.mrb[2].mxu1  ;;  %v642_v26 = vmax.f32 %v620_v19, 0.0 }
 0x1b3   : > { %v695_v14 = vmul.f32 %v662_v62, %v639_v10  ;;  %v615_v15 = vadd.f32 %v848_v12, %v486_v60  ;;  %v609_v16 = vpop.f32.mrb[3].mxu0  ;;  %v629_v17 = vpop.f32.mrb[3].mxu1  ;;  %v635_v32 = vadd.f32 %v854_v13, %v506_v29  ;;  %v699_v38 = vmul.f32 %v682_v34, %v643_v30 }
 0x1b4   : > { %v694_v18 = vmul.f32 %v657_v61, %v638_v11  ;;  %v610_v20 = vadd.f32 %v609_v16, %v481_v59  ;;  %v630_v28 = vadd.f32 %v629_v17, %v501_v9  ;;  %v698_v35 = vmul.f32 %v677_v21, %v642_v26 }
 0x1b5   : > { %v641_v24 = vmax.f32 %v615_v15, 0.0  ;;  %v645_v39 = vmax.f32 %v635_v32, 0.0 }
 0x1b6   : > { %v702_v23 = vadd.f32 %v695_v14, %v694_v18  ;;  %v640_v25 = vmax.f32 %v610_v20, 0.0  ;;  %v644_v37 = vmax.f32 %v630_v28, 0.0 }
 0x1b7   : > { %v697_v31 = vmul.f32 %v672_v2, %v641_v24  ;;  %v701_v48 = vmul.f32 %v692_v46, %v645_v39 }
 0x1b8   : > { %v696_v27 = vmul.f32 %v667_v0, %v640_v25  ;;  %v700_v45 = vmul.f32 %v687_v41, %v644_v37 }
 0x1ba   : > { %v703_v33 = vadd.f32 %v702_v23, %v696_v27 }
 0x1bc   : > { %v704_v36 = vadd.f32 %v703_v33, %v697_v31 }
 0x1be   : > { %v705_v40 = vadd.f32 %v704_v36, %v698_v35 }
 0x1c0   : > { %v706_v42 = vadd.f32 %v705_v40, %v699_v38 }
 0x1c2   : > { %v707_v49 = vadd.f32 %v706_v42, %v700_v45 }
 0x1c4   : > { %v708_v50 = vadd.f32 %v707_v49, %v701_v48 }
 0x1c6   : > { %v709_v53 = vrot.slane %v708_v50, 4 }
 0x1c8   : > { %v710_v44 = vadd.f32 %v709_v53, %v708_v50 }
 0x1ca   : > { %v711_v51 = vrot.slane %v710_v44, 2 }
 0x1cc   : > { %v712_v52 = vadd.f32 %v711_v51, %v710_v44 }
 0x1ce   : > { %v713_v55 = vrot.slane %v712_v52, 1 }
 0x1d0   : > { %v714_v57 = vadd.f32 %v713_v55, %v712_v52 }
 0x1d2   : > { %v725_v58 = vadd.f32 %v724_v56, %v714_v57 }
 0x1d4   : > { %726 = vst [vmem:[%s270_s30] sm:$0x1] %v725_v58 }
 0x1d5   : > { %943 = shalt.err (!%p940_p3)
}
 0x1d6   : > { %s944_s20 = scalar_lea.hbm %s1237_s15, 16  ;;  %s948_s23 = scalar_lea.hbm %s1286_s7, 32 }
 0x1d7   : > { %p945_p4 = scmp.ne.s32.totalorder %s1237_s15, %s944_s20  ;;  %p949_p9 = scmp.lt.u32.totalorder %s1237_s15, %s1286_s7 }
 0x1d8   : > { %p950_p10 = scmp.lt.u32.totalorder %s948_s23, %s944_s20  ;;  %p952_p12 = scmp.lt.u32.totalorder %s944_s20, %s1237_s15 }
 0x1d9   : > { %p946_p7 = pnand %p945_p4, %p1078_p5 }
 0x1da   : > { %p951_p11 = por %p950_p10, %p949_p9 }
 0x1db   : > { %p947_p8 = pneg %p946_p7 }
 0x1dc   : > { %p953_p13 = por %p952_p12, %p951_p11 }
 0x1de   : > { %p954_p0 = pnand %p953_p13, %p947_p8 }
 0x1e0   : > { %957 = shalt.err (!%p954_p0)
}
 0x1e1   : > { %879 = dma.vmem_to_hbm [thread:$0]  (%p1078_p5), %s1239_s9, 16, %s1237_s15, %s728_s16  }
 0x1e2 PF: > { %p885_p1 = scmp.ge.s32.totalorder %s992_s29, 2  ;;  %s752_s30 = sand.u32 1, %s980_s26  }
 0x1e3   : > { %s753_s10 = scalar_lea.sflag [#allocation4], %s752_s30 }
 0x1e4   : > { %p882_p2 = pnand %p885_p1, %p1082_p6 }
 0x1e6   : > { %975 = dma.done.wait (!%p882_p2), %s753_s10, 16  }
 0x1e7   : > { %977 = vsyncadd (!%p882_p2), %s753_s10, 4294967280  ;;  %p19_p3 = scmp.ge.s32.totalorder %s1065_s8, 4   ;;  %s1289_s26 = smov %s984_s27 }
 0x1e8   : > { %s1290_s27 = smov %s988_s28  ;;  %s1291_s28 = smov %s1076_s11 }
 0x1e9   : > { %s1292_s29 = smov %s1065_s8  ;;  %21 = sbr.rel (!%p19_p3) target bundleno = 6 (0x6), region = 83 }
 0x1f0   :  { %757 = vsyncpa [#allocation4], 1 }
 0x1f1   :  { %759 = vsyncpa [#allocation4 + $0x1], 1 }

</bundles_post_ra>
